<compile_context>
chip_gen: v5e
topology: v5e:2x2
jax: 0.10.0
libtpu: 0.0.40
codegen_flags: <defaults>
</compile_context>

<pallas_src>
import jax
import jax.numpy as jnp
from jax.experimental import pallas as pl
from jax.experimental.pallas import tpu as pltpu


def _round_up(x, m):
    return (x + m - 1) // m * m


def _mlp_kernel(x_ref, w1_ref, b1_ref, w2_ref, b2_ref, w3_ref, b3_ref, o_ref):
    # One batch tile per grid step. Weights/biases are whole-array VMEM residents.
    x = x_ref[...]

    # Layer 1: Linear + ReLU  (MXU, f32 accumulation)
    h1 = jnp.dot(x, w1_ref[...], preferred_element_type=jnp.float32) + b1_ref[...]
    h1 = jnp.maximum(h1, 0.0)

    # Layer 2: Linear + ReLU  (MXU, f32 accumulation)
    h2 = jnp.dot(h1, w2_ref[...], preferred_element_type=jnp.float32) + b2_ref[...]
    h2 = jnp.maximum(h2, 0.0)

    # Layer 3: out_features == 1 -> VPU multiply + lane reduction instead of an N=1 matmul.
    # w3_ref is (1, H); broadcast-multiply then reduce over the lane axis.
    out = jnp.sum(h2 * w3_ref[...], axis=-1, keepdims=True) + b3_ref[...]
    o_ref[...] = out.astype(o_ref.dtype)


def nn_forward(x, params, *, tile_b=1024):
    """Fused MLP forward pass, batch-tiled Pallas call.

    x: (B, input_dim) float32
    params: dict with w1 (D,H), b1 (1,H), w2 (H,H), b2 (1,H), w3 (H,1), b3 (1,1)
    returns: (B, 1) float32
    """
    B, D = x.shape
    w1, b1 = params["w1"], params["b1"]
    w2, b2 = params["w2"], params["b2"]
    w3, b3 = params["w3"], params["b3"]
    H = w1.shape[1]

    # Final layer weight as a (1, H) row for the VPU-multiply / lane-reduce path.
    w3_row = w3.reshape(1, H)

    # Batch tile: multiple of 8 sublanes, capped at the (padded) batch. 512-2048 is the
    # sweet spot for large B; small demo batches collapse to a single tile.
    tb = min(_round_up(tile_b, 8), _round_up(B, 8))
    B_pad = _round_up(B, tb)
    if B_pad != B:
        x = jnp.pad(x, ((0, B_pad - B), (0, 0)))

    grid = (pl.cdiv(B_pad, tb),)

    # Weights/biases: constant block index -> fetched once, VMEM-resident across the grid.
    const2d = lambda a: pl.BlockSpec(a.shape, lambda i: (0, 0))

    out = pl.pallas_call(
        _mlp_kernel,
        out_shape=jax.ShapeDtypeStruct((B_pad, 1), jnp.float32),
        grid=grid,
        in_specs=[
            pl.BlockSpec((tb, D), lambda i: (i, 0)),   # x: streamed per batch tile
            const2d(w1), const2d(b1),
            const2d(w2), const2d(b2),
            const2d(w3_row), const2d(b3),
        ],
        out_specs=pl.BlockSpec((tb, 1), lambda i: (i, 0)),
        compiler_params=pltpu.CompilerParams(
            dimension_semantics=("parallel",),          # megacore-shard batch on v7x
            vmem_limit_bytes=32 * 1024 * 1024,          # safe on v7x (64 MiB physical)
        ),
    )(x, w1, b1, w2, b2, w3_row, b3)

    return out[:B]


def init_params(key, input_dim, hidden_dim, dtype=jnp.float32):
    """Deterministic init mimicking PyTorch nn.Linear default (uniform +/- 1/sqrt(fan_in)).

    Weights stored as (in_features, out_features) so the kernel does x @ W.
    (dtype=jnp.bfloat16 halves weight HBM/VMEM traffic on v5e/v6e/v7x; accumulation stays f32.)
    """
    ks = jax.random.split(key, 6)

    def uniform(k, shape, fan_in):
        bound = 1.0 / jnp.sqrt(jnp.float32(fan_in))
        return jax.random.uniform(k, shape, jnp.float32, -bound, bound).astype(dtype)

    return {
        "w1": uniform(ks[0], (input_dim, hidden_dim), input_dim),
        "b1": uniform(ks[1], (1, hidden_dim), input_dim),
        "w2": uniform(ks[2], (hidden_dim, hidden_dim), hidden_dim),
        "b2": uniform(ks[3], (1, hidden_dim), hidden_dim),
        "w3": uniform(ks[4], (hidden_dim, 1), hidden_dim),
        "b3": uniform(ks[5], (1, 1), hidden_dim),
    }


def nn_forward_ref(x, p):
    """Pure-JAX reference for correctness check."""
    h1 = jnp.maximum(x @ p["w1"] + p["b1"], 0.0)
    h2 = jnp.maximum(h1 @ p["w2"] + p["b2"], 0.0)
    return h2 @ p["w3"] + p["b3"]


if __name__ == "__main__":
    key = jax.random.PRNGKey(0)
    k_x, k_p = jax.random.split(key)

    batch = 200          # not a multiple of the tile -> exercises the padding path
    input_dim = 16
    hidden_dim = 32

    x = jax.random.normal(k_x, (batch, input_dim), dtype=jnp.float32)
    params = init_params(k_p, input_dim, hidden_dim)

    # Small tile so the demo runs multiple pipelined grid steps (grid=(2,)).
    out = nn_forward(x, params, tile_b=128)
    out = jax.block_until_ready(out)

    ref = nn_forward_ref(x, params)
    assert out.shape == (batch, 1)
    assert jnp.allclose(out, ref, atol=2e-5, rtol=2e-5), "mismatch vs JAX reference"

    print("KERNEL_OK")
</pallas_src>

<mosaic_0001>
module attributes {stable_mosaic.version = 11 : i64} {
  func.func @_mlp_kernel(%arg0: i32, %arg1: memref<128x16xf32, #tpu.memory_space<vmem>>, %arg2: memref<16x32xf32, #tpu.memory_space<vmem>>, %arg3: memref<1x32xf32, #tpu.memory_space<vmem>>, %arg4: memref<32x32xf32, #tpu.memory_space<vmem>>, %arg5: memref<1x32xf32, #tpu.memory_space<vmem>>, %arg6: memref<1x32xf32, #tpu.memory_space<vmem>>, %arg7: memref<1x1xf32, #tpu.memory_space<vmem>>, %arg8: memref<128x1xf32, #tpu.memory_space<vmem>>) attributes {dimension_semantics = [#tpu.dimension_semantics<parallel>], iteration_bounds = array<i64: 2>, scalar_prefetch = 0 : i64, scratch_operands = 0 : i64, tpu.core_type = #tpu.core_type<tc>, window_params = [{transform_indices = @transform_0, window_bounds = array<i64: 128, 16>}, {pipeline_mode = #tpu.pipeline_mode<synchronous>, transform_indices = @transform_1, window_bounds = array<i64: 16, 32>}, {pipeline_mode = #tpu.pipeline_mode<synchronous>, transform_indices = @transform_2, window_bounds = array<i64: 1, 32>}, {pipeline_mode = #tpu.pipeline_mode<synchronous>, transform_indices = @transform_3, window_bounds = array<i64: 32, 32>}, {pipeline_mode = #tpu.pipeline_mode<synchronous>, transform_indices = @transform_4, window_bounds = array<i64: 1, 32>}, {pipeline_mode = #tpu.pipeline_mode<synchronous>, transform_indices = @transform_5, window_bounds = array<i64: 1, 32>}, {pipeline_mode = #tpu.pipeline_mode<synchronous>, transform_indices = @transform_6, window_bounds = array<i64: 1, 1>}, {transform_indices = @transform_7, window_bounds = array<i64: 128, 1>}]} {
    %c0 = arith.constant 0 : index
    %c0_0 = arith.constant 0 : index
    %0 = vector.load %arg1[%c0, %c0_0] : memref<128x16xf32, #tpu.memory_space<vmem>>, vector<128x16xf32>
    %c0_1 = arith.constant 0 : index
    %c0_2 = arith.constant 0 : index
    %1 = vector.load %arg2[%c0_1, %c0_2] : memref<16x32xf32, #tpu.memory_space<vmem>>, vector<16x32xf32>
    %cst = arith.constant dense<0.000000e+00> : vector<128x32xf32>
    %2 = tpu.matmul %0, %1, %cst {dimension_numbers = #tpu.dot_dimension_numbers<[1], [0], [0], [1], [0, 0, 1, 1], [], []>} : vector<128x16xf32>, vector<16x32xf32>, vector<128x32xf32> -> vector<128x32xf32>
    %c0_3 = arith.constant 0 : index
    %c0_4 = arith.constant 0 : index
    %3 = vector.load %arg3[%c0_3, %c0_4] : memref<1x32xf32, #tpu.memory_space<vmem>>, vector<1x32xf32>
    %4 = vector.broadcast %3 : vector<1x32xf32> to vector<128x32xf32>
    %5 = arith.addf %2, %4 : vector<128x32xf32>
    %cst_5 = arith.constant 0.000000e+00 : f32
    %6 = vector.broadcast %cst_5 : f32 to vector<128x32xf32>
    %7 = arith.maximumf %5, %6 : vector<128x32xf32>
    %c0_6 = arith.constant 0 : index
    %c0_7 = arith.constant 0 : index
    %8 = vector.load %arg4[%c0_6, %c0_7] : memref<32x32xf32, #tpu.memory_space<vmem>>, vector<32x32xf32>
    %cst_8 = arith.constant dense<0.000000e+00> : vector<128x32xf32>
    %9 = tpu.matmul %7, %8, %cst_8 {dimension_numbers = #tpu.dot_dimension_numbers<[1], [0], [0], [1], [0, 0, 1, 1], [], []>} : vector<128x32xf32>, vector<32x32xf32>, vector<128x32xf32> -> vector<128x32xf32>
    %c0_9 = arith.constant 0 : index
    %c0_10 = arith.constant 0 : index
    %10 = vector.load %arg5[%c0_9, %c0_10] : memref<1x32xf32, #tpu.memory_space<vmem>>, vector<1x32xf32>
    %11 = vector.broadcast %10 : vector<1x32xf32> to vector<128x32xf32>
    %12 = arith.addf %9, %11 : vector<128x32xf32>
    %cst_11 = arith.constant 0.000000e+00 : f32
    %13 = vector.broadcast %cst_11 : f32 to vector<128x32xf32>
    %14 = arith.maximumf %12, %13 : vector<128x32xf32>
    %c0_12 = arith.constant 0 : index
    %c0_13 = arith.constant 0 : index
    %15 = vector.load %arg6[%c0_12, %c0_13] : memref<1x32xf32, #tpu.memory_space<vmem>>, vector<1x32xf32>
    %16 = vector.broadcast %15 : vector<1x32xf32> to vector<128x32xf32>
    %17 = arith.mulf %14, %16 : vector<128x32xf32>
    %cst_14 = arith.constant dense<0.000000e+00> : vector<128xf32>
    %18 = vector.multi_reduction <add>, %17, %cst_14 [1] : vector<128x32xf32> to vector<128xf32>
    %19 = vector.shape_cast %18 : vector<128xf32> to vector<128x1xf32>
    %c0_15 = arith.constant 0 : index
    %c0_16 = arith.constant 0 : index
    %20 = vector.load %arg7[%c0_15, %c0_16] : memref<1x1xf32, #tpu.memory_space<vmem>>, vector<1x1xf32>
    %21 = vector.broadcast %20 : vector<1x1xf32> to vector<128x1xf32>
    %22 = arith.addf %19, %21 : vector<128x1xf32>
    %c0_17 = arith.constant 0 : index
    %c0_18 = arith.constant 0 : index
    %23 = vector.load %arg8[%c0_17, %c0_18] : memref<128x1xf32, #tpu.memory_space<vmem>>, vector<128x1xf32>
    tpu.vector_store %arg8[%c0_17, %c0_18], %22 {strides = array<i32>} : memref<128x1xf32, #tpu.memory_space<vmem>>, vector<128x1xf32>,
    return
  }
  func.func @transform_0(%arg0: i32) -> (i32, i32) {
    %c0_i32 = arith.constant 0 : i32
    %c0_i32_0 = arith.constant 0 : i32
    return %arg0, %c0_i32 : i32, i32
  }
  func.func @transform_1(%arg0: i32) -> (i32, i32) {
    %c0_i32 = arith.constant 0 : i32
    %c0_i32_0 = arith.constant 0 : i32
    %c0_i32_1 = arith.constant 0 : i32
    return %c0_i32, %c0_i32_0 : i32, i32
  }
  func.func @transform_2(%arg0: i32) -> (i32, i32) {
    %c0_i32 = arith.constant 0 : i32
    %c0_i32_0 = arith.constant 0 : i32
    %c0_i32_1 = arith.constant 0 : i32
    return %c0_i32, %c0_i32_0 : i32, i32
  }
  func.func @transform_3(%arg0: i32) -> (i32, i32) {
    %c0_i32 = arith.constant 0 : i32
    %c0_i32_0 = arith.constant 0 : i32
    %c0_i32_1 = arith.constant 0 : i32
    return %c0_i32, %c0_i32_0 : i32, i32
  }
  func.func @transform_4(%arg0: i32) -> (i32, i32) {
    %c0_i32 = arith.constant 0 : i32
    %c0_i32_0 = arith.constant 0 : i32
    %c0_i32_1 = arith.constant 0 : i32
    return %c0_i32, %c0_i32_0 : i32, i32
  }
  func.func @transform_5(%arg0: i32) -> (i32, i32) {
    %c0_i32 = arith.constant 0 : i32
    %c0_i32_0 = arith.constant 0 : i32
    %c0_i32_1 = arith.constant 0 : i32
    return %c0_i32, %c0_i32_0 : i32, i32
  }
  func.func @transform_6(%arg0: i32) -> (i32, i32) {
    %c0_i32 = arith.constant 0 : i32
    %c0_i32_0 = arith.constant 0 : i32
    %c0_i32_1 = arith.constant 0 : i32
    return %c0_i32, %c0_i32_0 : i32, i32
  }
  func.func @transform_7(%arg0: i32) -> (i32, i32) {
    %c0_i32 = arith.constant 0 : i32
    %c0_i32_0 = arith.constant 0 : i32
    return %arg0, %c0_i32 : i32, i32
  }
}

</mosaic_0001>

<bundles_post_ra>
// kernel: tpu_custom_call.1
= control target key start
LH: loop header
LB: loop body
LE: loop exit
PB: predicated region body
PF: predicated region fallthrough
CT: control target
= control target key end

     0   :  { %s847_s26 = smov 0   ;;  %s1052_s0 = inlined_call_operand.vmem [shape: f32[256,16], index: 0, kind: input, shape index: {}]   ;;  %s1053_s1 = inlined_call_operand.vmem [shape: f32[16,32], index: 1, kind: input, shape index: {}]   ;;  %s1054_s2 = inlined_call_operand.vmem [shape: f32[1,32], index: 2, kind: input, shape index: {}]   ;;  %s1055_s3 = inlined_call_operand.vmem [shape: f32[32,32], index: 3, kind: input, shape index: {}]   ;;  %s1056_s4 = inlined_call_operand.vmem [shape: f32[1,32], index: 4, kind: input, shape index: {}]   ;;  %s1057_s5 = inlined_call_operand.vmem [shape: f32[1,32], index: 5, kind: input, shape index: {}]   ;;  %s1058_s6 = inlined_call_operand.<no memory space> [shape: f32[1,1], index: 6, kind: input, shape index: {}]   ;;  %s1059_s7 = inlined_call_operand.vmem [shape: f32[256,1], index: 7, kind: output, shape index: {}]  }
   0x1   :  { %v12_v0 = vstv %s1058_s6 }
   0x2   :  { %13 = vst [vmem:[#allocation2] sm:$0x1] %v12_v0 }
   0x3 LB: > { %s735_s27 = sadd.s32 4294967295, %s802_s26   ;;  %p739_p0 = scmp.ge.s32.totalorder %s802_s26, 1  ;;  %s802_s26 = sphi %s847_s26, %s19_s26  }
   0x4   : > { %p240_p1 = scmp.lt.s32.totalorder %s802_s26, 3 }
   0x6   : > { %p241_p2 = pnand %p739_p0, %p240_p1 }
   0x7   : > { %s740_s8 = sshll.u32 (!%p241_p2), %s735_s27, 4 }
   0x8   : > { %244 = sbr.rel (%p241_p2) target bundleno = 525 (0x20d), region = 48  ;;  %p273_p3 = scmp.lt.s32.totalorder (!%p241_p2), %s740_s8, 31 }
   0xd   : > { %v301_v1 = vld [vmem:[%s1053_s1 + $0x8] sm:$0xff]  ;;  %v300_v2 = vld [vmem:[%s1053_s1] sm:$0xff]  ;;  %s1061_s8 = smov (!%p273_p3, %s740_s8), 31  ;;  %vm306_vm0 = vcmask 130048   ;;  %v439_v13 = vld [vmem:[%s1055_s3 + $0x18] sm:$0xff]  ;;  %vm444_vm1 = vcmask 261120  }
   0xe   : > { %369 = vmatpush.msra.mxu0 %v301_v1  ;;  %778 = vmatpush.msra.mxu3 %v301_v1  ;;  %s741_s9 = sshll.u32 %s1061_s8, 3  ;;  %v438_v20 = vld [vmem:[%s1055_s3 + $0x10] sm:$0xff]  ;;  %v437_v21 = vld [vmem:[%s1055_s3 + $0x8] sm:$0xff]  ;;  %v436_v22 = vld [vmem:[%s1055_s3] sm:$0xff]  ;;  %vm662_vm2 = vcmask 7168  }
   0xf   : > { %s869_s12 = scalar_lea.vmem %s1052_s0, %s741_s9  ;;  %505 = vmatpush.msra.mxu1 %v439_v13  ;;  %780 = vmatpush.msra.mxu2 %v439_v13  ;;  %v918_v23 = vld [vmem:[%s1054_s2] ss:$0 sm:$0xff]  ;;  %s1010_s6 = scalar_lea.vmem %s1059_s7, %s741_s9 }
  0x10   : > { %370 = vmatpush.msra.mxu0 %v300_v2  ;;  %779 = vmatpush.msra.mxu3 %v300_v2  ;;  %v284_v3 = vld [vmem:[%s869_s12] sm:$0xff]  ;;  %v285_v4 = vld [vmem:[%s869_s12 + $0x8] sm:$0xff]  ;;  %v286_v5 = vld [vmem:[%s869_s12 + $0x10] sm:$0xff] }
  0x11   : > { %744 = vmatmul.msk.f32.vlgmr.msra.gmra.mxu0 %vm306_vm0, %v284_v3  ;;  %v287_v6 = vld [vmem:[%s869_s12 + $0x18] sm:$0xff]  ;;  %v288_v7 = vld [vmem:[%s869_s12 + $0x20] sm:$0xff]  ;;  %v293_v8 = vld [vmem:[%s869_s12 + $0x48] sm:$0xff]  ;;  %506 = vmatpush.msra.mxu1 %v438_v20 }
  0x12   : > { %753 = vmatmul.msk.f32.vlgmr.msra.gmra.mxu3 %vm306_vm0, %v293_v8  ;;  %v289_v9 = vld [vmem:[%s869_s12 + $0x28] sm:$0xff]  ;;  %v294_v10 = vld [vmem:[%s869_s12 + $0x50] sm:$0xff]  ;;  %v295_v12 = vld [vmem:[%s869_s12 + $0x58] sm:$0xff]  ;;  %781 = vmatpush.msra.mxu2 %v438_v20 }
  0x13   : > { %v290_v11 = vld [vmem:[%s869_s12 + $0x30] sm:$0xff]  ;;  %v291_v14 = vld [vmem:[%s869_s12 + $0x38] sm:$0xff]  ;;  %v296_v15 = vld [vmem:[%s869_s12 + $0x60] sm:$0xff]  ;;  %507 = vmatpush.msra.mxu1 %v437_v21 }
  0x14   : > { %v292_v16 = vld [vmem:[%s869_s12 + $0x40] sm:$0xff]  ;;  %v297_v17 = vld [vmem:[%s869_s12 + $0x68] sm:$0xff]  ;;  %v298_v18 = vld [vmem:[%s869_s12 + $0x70] sm:$0xff]  ;;  %782 = vmatpush.msra.mxu2 %v437_v21 }
  0x15   : > { %v299_v19 = vld [vmem:[%s869_s12 + $0x78] sm:$0xff]  ;;  %508 = vmatpush.msra.mxu1 %v436_v22  ;;  %v955_v8 = vld [vmem:[%s1056_s4] ss:$0 sm:$0xff] }
  0x16   : > { %783 = vmatpush.msra.mxu2 %v436_v22 }
  0x19   : > { %745 = vmatmul.msk.f32.gmra.mxu0 %vm306_vm0, %v285_v4 }
  0x1a   : > { %754 = vmatmul.msk.f32.gmra.mxu3 %vm306_vm0, %v294_v10 }
  0x21   : > { %746 = vmatmul.msk.f32.gmra.mxu0 %vm306_vm0, %v286_v5 }
  0x22   : > { %755 = vmatmul.msk.f32.gmra.mxu3 %vm306_vm0, %v295_v12 }
  0x29   : > { %747 = vmatmul.msk.f32.gmra.mxu0 %vm306_vm0, %v287_v6 }
  0x2a   : > { %756 = vmatmul.msk.f32.gmra.mxu3 %vm306_vm0, %v296_v15 }
  0x31   : > { %748 = vmatmul.msk.f32.gmra.mxu0 %vm306_vm0, %v288_v7 }
  0x32   : > { %757 = vmatmul.msk.f32.gmra.mxu3 %vm306_vm0, %v297_v17 }
  0x39   : > { %749 = vmatmul.msk.f32.gmra.mxu0 %vm306_vm0, %v289_v9 }
  0x3a   : > { %758 = vmatmul.msk.f32.gmra.mxu3 %vm306_vm0, %v298_v18 }
  0x41   : > { %750 = vmatmul.msk.f32.gmra.mxu0 %vm306_vm0, %v290_v11  ;;  %v961_v11 = vld [vmem:[%s1057_s5] ss:$0 sm:$0xff] }
  0x42   : > { %759 = vmatmul.msk.f32.gmra.mxu3 %vm306_vm0, %v299_v19 }
  0x49   : > { %751 = vmatmul.msk.f32.gmra.mxu0 %vm306_vm0, %v291_v14 }
  0x51   : > { %752 = vmatmul.msk.f32.gmra.mxu0 %vm306_vm0, %v292_v16 }
  0x8e   : > { %v372_v24 = vpop.f32.mrf.mxu0 }
  0x8f   : > { %v373_v25 = vadd.f32 %v918_v23, %v372_v24 }
  0x91   : > { %v420_v26 = vmax.f32 %v373_v25, 0.0 }
  0x93   : > { %760 = vmatmul.msk.f32.vlgmr.msra.gmra.mxu1 %vm444_vm1, %v420_v26 }
  0x95   : > { %v399_v45 = vpop.f32.mrf.mxu3 }
  0x96   : > { %v375_v27 = vpop.f32.mrf.mxu0  ;;  %v400_v53 = vadd.f32 %v918_v23, %v399_v45 }
  0x97   : > { %v376_v28 = vadd.f32 %v918_v23, %v375_v27 }
  0x98   : > { %v429_v54 = vmax.f32 %v400_v53, 0.0 }
  0x99   : > { %v421_v29 = vmax.f32 %v376_v28, 0.0 }
  0x9b   : > { %761 = vmatmul.msk.f32.gmra.mxu1 %vm444_vm1, %v421_v29 }
  0x9d   : > { %v402_v50 = vpop.f32.mrf.mxu3 }
  0x9e   : > { %v378_v30 = vpop.f32.mrf.mxu0  ;;  %v403_v56 = vadd.f32 %v918_v23, %v402_v50 }
  0x9f   : > { %v379_v31 = vadd.f32 %v918_v23, %v378_v30 }
  0xa0   : > { %v430_v57 = vmax.f32 %v403_v56, 0.0 }
  0xa1   : > { %v422_v32 = vmax.f32 %v379_v31, 0.0 }
  0xa3   : > { %762 = vmatmul.msk.f32.gmra.mxu1 %vm444_vm1, %v422_v32 }
  0xa5   : > { %v405_v55 = vpop.f32.mrf.mxu3 }
  0xa6   : > { %v381_v33 = vpop.f32.mrf.mxu0  ;;  %v406_v59 = vadd.f32 %v918_v23, %v405_v55 }
  0xa7   : > { %v382_v34 = vadd.f32 %v918_v23, %v381_v33 }
  0xa8   : > { %v431_v60 = vmax.f32 %v406_v59, 0.0 }
  0xa9   : > { %v423_v35 = vmax.f32 %v382_v34, 0.0 }
  0xab   : > { %763 = vmatmul.msk.f32.gmra.mxu1 %vm444_vm1, %v423_v35 }
  0xad   : > { %v408_v58 = vpop.f32.mrf.mxu3 }
  0xae   : > { %v384_v36 = vpop.f32.mrf.mxu0  ;;  %v409_v61 = vadd.f32 %v918_v23, %v408_v58 }
  0xaf   : > { %v385_v37 = vadd.f32 %v918_v23, %v384_v36 }
  0xb0   : > { %v432_v63 = vmax.f32 %v409_v61, 0.0 }
  0xb1   : > { %v424_v38 = vmax.f32 %v385_v37, 0.0 }
  0xb3   : > { %764 = vmatmul.msk.f32.gmra.mxu1 %vm444_vm1, %v424_v38 }
  0xb5   : > { %v411_v62 = vpop.f32.mrf.mxu3 }
  0xb6   : > { %v387_v39 = vpop.f32.mrf.mxu0  ;;  %v412_v0 = vadd.f32 %v918_v23, %v411_v62 }
  0xb7   : > { %v388_v40 = vadd.f32 %v918_v23, %v387_v39 }
  0xb8   : > { %v433_v2 = vmax.f32 %v412_v0, 0.0 }
  0xb9   : > { %v425_v41 = vmax.f32 %v388_v40, 0.0 }
  0xbb   : > { %765 = vmatmul.msk.f32.gmra.mxu1 %vm444_vm1, %v425_v41 }
  0xbd   : > { %v414_v1 = vpop.f32.mrf.mxu3 }
  0xbe   : > { %v390_v42 = vpop.f32.mrf.mxu0  ;;  %v415_v3 = vadd.f32 %v918_v23, %v414_v1 }
  0xbf   : > { %v391_v43 = vadd.f32 %v918_v23, %v390_v42 }
  0xc0   : > { %v434_v4 = vmax.f32 %v415_v3, 0.0 }
  0xc1   : > { %v426_v44 = vmax.f32 %v391_v43, 0.0 }
  0xc3   : > { %766 = vmatmul.msk.f32.gmra.mxu1 %vm444_vm1, %v426_v44 }
  0xc5   : > { %v417_v5 = vpop.f32.mrf.mxu3 }
  0xc6   : > { %v393_v46 = vpop.f32.mrf.mxu0  ;;  %v418_v6 = vadd.f32 %v918_v23, %v417_v5 }
  0xc7   : > { %v394_v47 = vadd.f32 %v918_v23, %v393_v46 }
  0xc8   : > { %v435_v7 = vmax.f32 %v418_v6, 0.0 }
  0xc9   : > { %v427_v48 = vmax.f32 %v394_v47, 0.0 }
  0xcb   : > { %767 = vmatmul.msk.f32.gmra.mxu1 %vm444_vm1, %v427_v48 }
  0xce   : > { %v396_v49 = vpop.f32.mrf.mxu0 }
  0xcf   : > { %v397_v51 = vadd.f32 %v918_v23, %v396_v49 }
  0xd1   : > { %v428_v52 = vmax.f32 %v397_v51, 0.0 }
  0xd3   : > { %768 = vmatmul.msk.f32.vlgmr.msra.gmra.mxu2 %vm444_vm1, %v428_v52 }
  0xdb   : > { %769 = vmatmul.msk.f32.gmra.mxu2 %vm444_vm1, %v429_v54 }
  0xe3   : > { %770 = vmatmul.msk.f32.gmra.mxu2 %vm444_vm1, %v430_v57 }
  0xeb   : > { %771 = vmatmul.msk.f32.gmra.mxu2 %vm444_vm1, %v431_v60 }
  0xf3   : > { %772 = vmatmul.msk.f32.gmra.mxu2 %vm444_vm1, %v432_v63 }
  0xfb   : > { %773 = vmatmul.msk.f32.gmra.mxu2 %vm444_vm1, %v433_v2 }
 0x103   : > { %774 = vmatmul.msk.f32.gmra.mxu2 %vm444_vm1, %v434_v4 }
 0x10b   : > { %775 = vmatmul.msk.f32.gmra.mxu2 %vm444_vm1, %v435_v7 }
 0x110   : > { %v510_v9 = vpop.f32.mrf.mxu1 }
 0x111   : > { %v511_v10 = vadd.f32 %v955_v8, %v510_v9 }
 0x113   : > { %v558_v12 = vmax.f32 %v511_v10, 0.0 }
 0x115   : > { %v578_v13 = vmul.f32 %v961_v11, %v558_v12 }
 0x117   : > { %v594_v14 = vsel %vm444_vm1, %v578_v13, 0.0 }
 0x118   : > { %v513_v15 = vpop.f32.mrf.mxu1  ;;  %595 = vadd.xlane.f32.xlu0 %v594_v14 }
 0x119   : > { %v514_v16 = vadd.f32 %v955_v8, %v513_v15 }
 0x11b   : > { %v559_v17 = vmax.f32 %v514_v16, 0.0 }
 0x11d   : > { %v579_v18 = vmul.f32 %v961_v11, %v559_v17 }
 0x11f   : > { %v597_v19 = vsel %vm444_vm1, %v579_v18, 0.0 }
 0x120   : > { %v516_v20 = vpop.f32.mrf.mxu1  ;;  %598 = vadd.xlane.f32.xlu0 %v597_v19 }
 0x121   : > { %v517_v21 = vadd.f32 %v955_v8, %v516_v20  ;;  %v795_v20 = vld [vmem:[#allocation2] ss:$0 sm:$0xff] }
 0x123   : > { %v560_v22 = vmax.f32 %v517_v21, 0.0 }
 0x125   : > { %v580_v23 = vmul.f32 %v961_v11, %v560_v22 }
 0x127   : > { %v600_v24 = vsel %vm444_vm1, %v580_v23, 0.0 }
 0x128   : > { %v519_v25 = vpop.f32.mrf.mxu1  ;;  %601 = vadd.xlane.f32.xlu1 %v600_v24 }
 0x129   : > { %v520_v26 = vadd.f32 %v955_v8, %v519_v25 }
 0x12b   : > { %v561_v27 = vmax.f32 %v520_v26, 0.0 }
 0x12d   : > { %v581_v28 = vmul.f32 %v961_v11, %v561_v27 }
 0x12f   : > { %v603_v29 = vsel %vm444_vm1, %v581_v28, 0.0 }
 0x130   : > { %v522_v30 = vpop.f32.mrf.mxu1  ;;  %604 = vadd.xlane.f32.xlu1 %v603_v29 }
 0x131   : > { %v523_v31 = vadd.f32 %v955_v8, %v522_v30 }
 0x133   : > { %v562_v32 = vmax.f32 %v523_v31, 0.0 }
 0x135   : > { %v582_v33 = vmul.f32 %v961_v11, %v562_v32 }
 0x137   : > { %v606_v34 = vsel %vm444_vm1, %v582_v33, 0.0 }
 0x138   : > { %v525_v35 = vpop.f32.mrf.mxu1  ;;  %607 = vadd.xlane.f32.xlu2 %v606_v34 }
 0x139   : > { %v526_v36 = vadd.f32 %v955_v8, %v525_v35 }
 0x13b   : > { %v563_v37 = vmax.f32 %v526_v36, 0.0 }
 0x13d   : > { %v583_v38 = vmul.f32 %v961_v11, %v563_v37 }
 0x13f   : > { %v609_v39 = vsel %vm444_vm1, %v583_v38, 0.0 }
 0x140   : > { %v528_v40 = vpop.f32.mrf.mxu1  ;;  %610 = vadd.xlane.f32.xlu2 %v609_v39 }
 0x141   : > { %v529_v41 = vadd.f32 %v955_v8, %v528_v40 }
 0x143   : > { %v564_v42 = vmax.f32 %v529_v41, 0.0 }
 0x145   : > { %v584_v43 = vmul.f32 %v961_v11, %v564_v42 }
 0x147   : > { %v612_v44 = vsel %vm444_vm1, %v584_v43, 0.0 }
 0x148   : > { %v531_v45 = vpop.f32.mrf.mxu1  ;;  %613 = vadd.xlane.f32.xlu0 %v612_v44 }
 0x149   : > { %v532_v46 = vadd.f32 %v955_v8, %v531_v45 }
 0x14b   : > { %v565_v47 = vmax.f32 %v532_v46, 0.0 }
 0x14d   : > { %v585_v48 = vmul.f32 %v961_v11, %v565_v47 }
 0x14f   : > { %v615_v49 = vsel %vm444_vm1, %v585_v48, 0.0 }
 0x150   : > { %616 = vadd.xlane.f32.xlu1 %v615_v49 }
 0x156   : > { %v534_v50 = vpop.f32.mrf.mxu2 }
 0x157   : > { %v535_v51 = vadd.f32 %v955_v8, %v534_v50 }
 0x159   : > { %v566_v52 = vmax.f32 %v535_v51, 0.0 }
 0x15b   : > { %v586_v53 = vmul.f32 %v961_v11, %v566_v52 }
 0x15d   : > { %v618_v54 = vsel %vm444_vm1, %v586_v53, 0.0 }
 0x15e   : > { %v537_v55 = vpop.f32.mrf.mxu2  ;;  %619 = vadd.xlane.f32.xlu2 %v618_v54 }
 0x15f   : > { %v538_v56 = vadd.f32 %v955_v8, %v537_v55 }
 0x161   : > { %v567_v57 = vmax.f32 %v538_v56, 0.0 }
 0x163   : > { %v587_v58 = vmul.f32 %v961_v11, %v567_v57 }
 0x165   : > { %v621_v59 = vsel %vm444_vm1, %v587_v58, 0.0 }
 0x166   : > { %v540_v60 = vpop.f32.mrf.mxu2  ;;  %622 = vadd.xlane.f32.xlu0 %v621_v59 }
 0x167   : > { %v541_v61 = vadd.f32 %v955_v8, %v540_v60 }
 0x169   : > { %v568_v62 = vmax.f32 %v541_v61, 0.0 }
 0x16b   : > { %v588_v63 = vmul.f32 %v961_v11, %v568_v62 }
 0x16d   : > { %v624_v0 = vsel %vm444_vm1, %v588_v63, 0.0 }
 0x16e   : > { %v543_v1 = vpop.f32.mrf.mxu2  ;;  %625 = vadd.xlane.f32.xlu1 %v624_v0 }
 0x16f   : > { %v544_v2 = vadd.f32 %v955_v8, %v543_v1 }
 0x171   : > { %v569_v3 = vmax.f32 %v544_v2, 0.0 }
 0x173   : > { %v589_v4 = vmul.f32 %v961_v11, %v569_v3 }
 0x175   : > { %v627_v5 = vsel %vm444_vm1, %v589_v4, 0.0 }
 0x176   : > { %v546_v6 = vpop.f32.mrf.mxu2  ;;  %628 = vadd.xlane.f32.xlu2 %v627_v5 }
 0x177   : > { %v547_v7 = vadd.f32 %v955_v8, %v546_v6 }
 0x179   : > { %v570_v9 = vmax.f32 %v547_v7, 0.0 }
 0x17b   : > { %v590_v10 = vmul.f32 %v961_v11, %v570_v9 }
 0x17d   : > { %v630_v12 = vsel %vm444_vm1, %v590_v10, 0.0 }
 0x17e   : > { %v549_v13 = vpop.f32.mrf.mxu2  ;;  %631 = vadd.xlane.f32.xlu0 %v630_v12 }
 0x17f   : > { %v550_v14 = vadd.f32 %v955_v8, %v549_v13 }
 0x181   : > { %v571_v15 = vmax.f32 %v550_v14, 0.0 }
 0x183   : > { %v591_v16 = vmul.f32 %v961_v11, %v571_v15 }
 0x185   : > { %v633_v17 = vsel %vm444_vm1, %v591_v16, 0.0 }
 0x186   : > { %v552_v18 = vpop.f32.mrf.mxu2  ;;  %634 = vadd.xlane.f32.xlu1 %v633_v17 }
 0x187   : > { %v553_v19 = vadd.f32 %v955_v8, %v552_v18 }
 0x189   : > { %v572_v21 = vmax.f32 %v553_v19, 0.0 }
 0x18b   : > { %v596_v22 = vpop.xlane.xlu0 %595  ;;  %v592_v23 = vmul.f32 %v961_v11, %v572_v21 }
 0x18c   : > { %v646_v24 = vadd.f32 %v795_v20, %v596_v22 }
 0x18d   : > { %v636_v25 = vsel %vm444_vm1, %v592_v23, 0.0 }
 0x18e   : > { %663 = vst.msk [vmem:[%s1010_s6] sm:$0xff] %vm662_vm2, %v646_v24  ;;  %v555_v26 = vpop.f32.mrf.mxu2  ;;  %637 = vadd.xlane.f32.xlu2 %v636_v25 }
 0x18f   : > { %v556_v27 = vadd.f32 %v955_v8, %v555_v26 }
 0x191   : > { %v573_v28 = vmax.f32 %v556_v27, 0.0 }
 0x193   : > { %v599_v29 = vpop.xlane.xlu0 %598  ;;  %v593_v30 = vmul.f32 %v961_v11, %v573_v28 }
 0x194   : > { %v647_v31 = vadd.f32 %v795_v20, %v599_v29 }
 0x195   : > { %v639_v32 = vsel %vm444_vm1, %v593_v30, 0.0 }
 0x196   : > { %664 = vst.msk [vmem:[%s1010_s6 + $0x8] sm:$0xff] %vm662_vm2, %v647_v31  ;;  %640 = vadd.xlane.f32.xlu0 %v639_v32 }
 0x19b   : > { %v602_v33 = vpop.xlane.xlu1 %601 }
 0x19c   : > { %v648_v34 = vadd.f32 %v795_v20, %v602_v33 }
 0x19e   : > { %665 = vst.msk [vmem:[%s1010_s6 + $0x10] sm:$0xff] %vm662_vm2, %v648_v34 }
 0x1a3   : > { %v605_v35 = vpop.xlane.xlu1 %604 }
 0x1a4   : > { %v649_v8 = vadd.f32 %v795_v20, %v605_v35 }
 0x1a6   : > { %666 = vst.msk [vmem:[%s1010_s6 + $0x18] sm:$0xff] %vm662_vm2, %v649_v8 }
 0x1ab   : > { %v608_v36 = vpop.xlane.xlu2 %607 }
 0x1ac   : > { %v650_v11 = vadd.f32 %v795_v20, %v608_v36 }
 0x1ae   : > { %667 = vst.msk [vmem:[%s1010_s6 + $0x20] sm:$0xff] %vm662_vm2, %v650_v11 }
 0x1b3   : > { %v611_v37 = vpop.xlane.xlu2 %610 }
 0x1b4   : > { %v651_v38 = vadd.f32 %v795_v20, %v611_v37 }
 0x1b6   : > { %668 = vst.msk [vmem:[%s1010_s6 + $0x28] sm:$0xff] %vm662_vm2, %v651_v38 }
 0x1bb   : > { %v614_v39 = vpop.xlane.xlu0 %613 }
 0x1bc   : > { %v652_v40 = vadd.f32 %v795_v20, %v614_v39 }
 0x1be   : > { %669 = vst.msk [vmem:[%s1010_s6 + $0x30] sm:$0xff] %vm662_vm2, %v652_v40 }
 0x1c3   : > { %v617_v41 = vpop.xlane.xlu1 %616 }
 0x1c4   : > { %v653_v42 = vadd.f32 %v795_v20, %v617_v41 }
 0x1c6   : > { %670 = vst.msk [vmem:[%s1010_s6 + $0x38] sm:$0xff] %vm662_vm2, %v653_v42 }
 0x1d1   : > { %v620_v43 = vpop.xlane.xlu2 %619 }
 0x1d2   : > { %v654_v44 = vadd.f32 %v795_v20, %v620_v43 }
 0x1d4   : > { %671 = vst.msk [vmem:[%s1010_s6 + $0x40] sm:$0xff] %vm662_vm2, %v654_v44 }
 0x1d9   : > { %v623_v45 = vpop.xlane.xlu0 %622 }
 0x1da   : > { %v655_v46 = vadd.f32 %v795_v20, %v623_v45 }
 0x1dc   : > { %672 = vst.msk [vmem:[%s1010_s6 + $0x48] sm:$0xff] %vm662_vm2, %v655_v46 }
 0x1e1   : > { %v626_v47 = vpop.xlane.xlu1 %625 }
 0x1e2   : > { %v656_v48 = vadd.f32 %v795_v20, %v626_v47 }
 0x1e4   : > { %673 = vst.msk [vmem:[%s1010_s6 + $0x50] sm:$0xff] %vm662_vm2, %v656_v48 }
 0x1e9   : > { %v629_v49 = vpop.xlane.xlu2 %628 }
 0x1ea   : > { %v657_v50 = vadd.f32 %v795_v20, %v629_v49 }
 0x1ec   : > { %674 = vst.msk [vmem:[%s1010_s6 + $0x58] sm:$0xff] %vm662_vm2, %v657_v50 }
 0x1f1   : > { %v632_v51 = vpop.xlane.xlu0 %631 }
 0x1f2   : > { %v658_v52 = vadd.f32 %v795_v20, %v632_v51 }
 0x1f4   : > { %675 = vst.msk [vmem:[%s1010_s6 + $0x60] sm:$0xff] %vm662_vm2, %v658_v52 }
 0x1f9   : > { %v635_v53 = vpop.xlane.xlu1 %634 }
 0x1fa   : > { %v659_v54 = vadd.f32 %v795_v20, %v635_v53 }
 0x1fc   : > { %676 = vst.msk [vmem:[%s1010_s6 + $0x68] sm:$0xff] %vm662_vm2, %v659_v54 }
 0x201   : > { %v638_v55 = vpop.xlane.xlu2 %637 }
 0x202   : > { %v660_v56 = vadd.f32 %v795_v20, %v638_v55 }
 0x204   : > { %677 = vst.msk [vmem:[%s1010_s6 + $0x70] sm:$0xff] %vm662_vm2, %v660_v56 }
 0x209   : > { %v641_v57 = vpop.xlane.xlu0 %640 }
 0x20a   : > { %v661_v58 = vadd.f32 %v795_v20, %v641_v57 }
 0x20c   : > { %678 = vst.msk [vmem:[%s1010_s6 + $0x78] sm:$0xff] %vm662_vm2, %v661_v58 }
 0x20d PF: > { %s19_s26 = sadd.s32 1, %s802_s26  }
 0x20e   : > { %p16_p4 = scmp.ge.s32.totalorder %s19_s26, 4  }
 0x210   :  { %18 = sbr.rel (!%p16_p4) target bundleno = 3 (0x3), region = 78 }

</bundles_post_ra>
